<compile_context>
chip_gen: v6e
topology: v6e:2x2x1
jax: 0.10.0
libtpu: 0.0.40
codegen_flags: <defaults>
</compile_context>

<pallas_src>
import jax
import jax.numpy as jnp
import numpy as np
from jax.experimental import pallas as pl
from jax.experimental.pallas import tpu as pltpu

# ---------------- small synthetic configuration ----------------
B = 2            # batch
T = 16           # num_clips (temporal length after frame pooling)
L = 8            # text sequence length
D = 32           # d_model
V = 16           # vocab_size
NUM_QUERY = 8    # model_cfg.num_query
LANES = 128      # lane-dense hidden / output width (padded, sliced in wrapper)

assert 3 * D + D <= LANES, "stage+text hidden must fit in one 128-lane slab"
assert 3 + V <= LANES, "stage+text output columns must fit in one 128-lane slab"


# ======================= Pallas kernel =======================

def fused_heads_kernel(x_ref, w1_ref, b1_ref, w2_ref, b2_ref, out_ref):
    """Fused (stage head + text MLP) as one stacked 2-matmul chain.

        out = relu(x @ W1c + b1c) @ W2c + b2c

    x   : (R, D)      bf16   (R = B*T video rows followed by B*L text rows)
    W1c : (D, 128)    bf16   folded stage weights | text first-layer weights
    W2c : (128, 128)  bf16   block-structured second layer (zero elsewhere)
    out : (R, 128)    f32    lane-dense, unmasked 128-lane stores
    All matmuls: bf16 x bf16 -> f32 accumulate (MXU).
    """
    x = x_ref[...]                                                       # (R, D) bf16
    h = jnp.dot(x, w1_ref[...], preferred_element_type=jnp.float32) + b1_ref[...]
    a = jnp.maximum(h, 0.0)                                              # (R, 128) f32
    out_ref[...] = (
        jnp.dot(a.astype(jnp.bfloat16), w2_ref[...],
                preferred_element_type=jnp.float32) + b2_ref[...])       # (R, 128) f32


# ======================= Pallas wrapper =======================

def fused_heads_pallas(xv2d, xt2d, fp):
    """xv2d: (N, D) bf16, xt2d: (M, D) bf16 ->
       ((N, 3) stage logits, (M, V) text logits)."""
    N, d = xv2d.shape
    M, _ = xt2d.shape
    x = jnp.concatenate([xv2d, xt2d], axis=0)           # (R, D) bf16, R = N + M
    R = N + M

    args = (x, fp["w1c"], fp["b1c"], fp["w2c"], fp["b2c"])

    def nbytes(a):
        return int(np.prod(a.shape)) * jnp.dtype(a.dtype).itemsize

    # actual arithmetic performed (padded widths) -- advisory only
    flops = 2 * R * (d * LANES + LANES * LANES)
    bytes_accessed = sum(nbytes(a) for a in args) + R * LANES * 4

    vmem_spec = pl.BlockSpec(memory_space=pltpu.MemorySpace.VMEM)

    out = pl.pallas_call(
        fused_heads_kernel,
        out_shape=jax.ShapeDtypeStruct((R, LANES), jnp.float32),
        in_specs=[vmem_spec] * len(args),
        out_specs=vmem_spec,
        cost_estimate=pl.CostEstimate(
            flops=int(flops), transcendentals=0,
            bytes_accessed=int(bytes_accessed)),
    )(*args)

    # lane-dense output slab -> slice back to logical row/column ranges
    stage2d = out[:N, :3]            # video rows, stage logit columns
    text2d = out[N:, 3:3 + V]        # text rows, vocab columns
    return stage2d, text2d


# ======================= external sub-modules (stubs) =======================

def frame_pooler(vid_feat):
    # TODO(synk): frame_pooler is an injected external module (architecture not
    # in this file); identity passthrough here.
    return vid_feat


def backbone(vid_feat, txt_feat, txt_mask, word_mask):
    # TODO(synk): backbone is an injected external multi-scale encoder;
    # passthrough producing a single feature level.
    del txt_mask, word_mask
    return [vid_feat], txt_feat


def head_stub(vid_feat_lvls, reference_centers):
    # TODO(synk): head is an injected external module; deterministic placeholder
    # proposals/scores derived from reference_centers only.
    del vid_feat_lvls
    b, nq = reference_centers.shape
    proposals = jnp.stack(
        [jnp.clip(reference_centers - 0.1, 0.0, 1.0),
         jnp.clip(reference_centers + 0.1, 0.0, 1.0)], axis=-1)      # (B, Nq, 2)
    scores = jnp.zeros((b, nq), jnp.float32)
    return [[proposals]], [[scores]]


# ======================= parameter init (deterministic) =======================

def _linear_init(key, fan_in, fan_out):
    kw, kb = jax.random.split(key)
    scale = 1.0 / np.sqrt(fan_in)
    w = jax.random.uniform(kw, (fan_in, fan_out), jnp.float32, -scale, scale)
    b = jax.random.uniform(kb, (1, fan_out), jnp.float32, -scale, scale)
    return w, b


def init_params(key):
    ks = jax.random.split(key, 16)
    # stage_mlp1: Linear(D, 3D)
    w1, b1 = _linear_init(ks[0], D, 3 * D)
    # stage_mlps: 3 clones of MLP([D, D, 1])
    wa, ba, wb, bb = [], [], [], []
    for i in range(3):
        w0, bi0 = _linear_init(ks[1 + 2 * i], D, D)
        w1_, bi1 = _linear_init(ks[2 + 2 * i], D, 1)
        wa.append(w0); ba.append(bi0); wb.append(w1_); bb.append(bi1)
    stage = dict(
        w1=w1, b1=b1,
        wa=jnp.stack(wa), ba=jnp.stack(ba),
        wb=jnp.stack(wb), bb=jnp.stack(bb),
    )
    # text_mlp: MLP([D, D, V])
    twa, tba = _linear_init(ks[8], D, D)
    twb, tbb = _linear_init(ks[9], D, V)
    text = dict(wa=twa, ba=tba, wb=twb, bb=tbb)
    return dict(stage=stage, text=text)


def build_fused_params(params):
    """Host-side weight fusion/padding (all algebra in f32, then cast):

       * stage_mlp1 is folded into the first linear of each stage head:
           W12_i = w1[:, iD:(i+1)D] @ wa_i
           b12_i = b1[:, iD:(i+1)D] @ wa_i + ba_i
         (exact: there is no nonlinearity between the two linears)
       * one combined first-layer weight  W1c (D, 128):
           cols [0, 3D)      = folded stage weights
           cols [3D, 3D+D)   = text first-layer weight
       * one combined second-layer weight W2c (128, 128):
           rows [iD,(i+1)D) -> col i        (stage logit i)
           rows [3D, 3D+D)  -> cols [3,3+V) (vocab logits)
           zero elsewhere (contributes exact zeros)
       * matmul weights bf16 (f32 MXU accumulation in-kernel), biases f32."""
    st, tx = params["stage"], params["text"]
    d = D

    w1c = jnp.zeros((d, LANES), jnp.float32)
    b1c = jnp.zeros((1, LANES), jnp.float32)
    for i in range(3):
        w1i = st["w1"][:, i * d:(i + 1) * d]          # (D, D)
        b1i = st["b1"][:, i * d:(i + 1) * d]          # (1, D)
        w12 = w1i @ st["wa"][i]                       # (D, D)
        b12 = b1i @ st["wa"][i] + st["ba"][i]         # (1, D)
        w1c = w1c.at[:, i * d:(i + 1) * d].set(w12)
        b1c = b1c.at[:, i * d:(i + 1) * d].set(b12)
    w1c = w1c.at[:, 3 * d:3 * d + d].set(tx["wa"])
    b1c = b1c.at[:, 3 * d:3 * d + d].set(tx["ba"])

    w2c = jnp.zeros((LANES, LANES), jnp.float32)
    b2c = jnp.zeros((1, LANES), jnp.float32)
    for i in range(3):
        w2c = w2c.at[i * d:(i + 1) * d, i].set(st["wb"][i][:, 0])
        b2c = b2c.at[0, i].set(st["bb"][i][0, 0])
    w2c = w2c.at[3 * d:3 * d + d, 3:3 + V].set(tx["wb"])
    b2c = b2c.at[0, 3:3 + V].set(tx["bb"][0])

    return dict(
        w1c=w1c.astype(jnp.bfloat16), b1c=b1c,
        w2c=w2c.astype(jnp.bfloat16), b2c=b2c,
    )


# ======================= forward (mirrors the PyTorch module) =======================

def forward(params, fused, vid_feat, txt_feat, txt_mask, word_mask=None, mode="inference"):
    b = vid_feat.shape[0]
    vid_feat = frame_pooler(vid_feat)
    vid_feat_lvls, txt_feat = backbone(vid_feat, txt_feat, txt_mask, word_mask)

    # stage_mlp1 -> 3x stage MLPs -> concat   AND   text_mlp  (single Pallas launch)
    xv = vid_feat_lvls[-1].reshape(-1, D).astype(jnp.bfloat16)
    xt = txt_feat.reshape(-1, D).astype(jnp.bfloat16)
    stage2d, text2d = fused_heads_pallas(xv, xt, fused)
    stage_logits = stage2d.reshape(b, -1, 3)
    text_logits = text2d.reshape(b, -1, V)

    topk_indices = jnp.broadcast_to(jnp.arange(NUM_QUERY), (b, NUM_QUERY))
    reference_centers = topk_indices.astype(jnp.float32) / NUM_QUERY

    proposal_lvls_group, score_lvls_group = head_stub(vid_feat_lvls, reference_centers)

    # TODO(synk): training/test-mode loss path (topk matching, focal/giou/l1,
    # cross-entropy masking) depends on runtime cfg + env flags; not ported.
    out = dict(scores=score_lvls_group[0][-1], boxxes=proposal_lvls_group[0][-1])
    # expose module-owned Pallas results for verification
    out.update(stage_logits=stage_logits, text_logits=text_logits,
               reference_centers=reference_centers)
    return out


# ======================= plain-JAX references =======================

def fused_mirror_ref(xv2d, xt2d, fp):
    """Mirrors the kernel math exactly (same fused weights, same casts)."""
    x = jnp.concatenate([xv2d, xt2d], axis=0)
    h = jnp.dot(x, fp["w1c"], preferred_element_type=jnp.float32) + fp["b1c"]
    a = jnp.maximum(h, 0.0)
    out = jnp.dot(a.astype(jnp.bfloat16), fp["w2c"],
                  preferred_element_type=jnp.float32) + fp["b2c"]
    n = xv2d.shape[0]
    return out[:n, :3], out[n:, 3:3 + V]


def stage_logits_ref_f32(x2d, p):
    """Original (unfused) module math in f32 — checks the host-side fold."""
    h = x2d @ p["w1"] + p["b1"]
    cols = []
    for i in range(3):
        hi = h[:, i * D:(i + 1) * D]
        a = jnp.maximum(hi @ p["wa"][i] + p["ba"][i], 0.0)
        cols.append(a @ p["wb"][i] + p["bb"][i])
    return jnp.concatenate(cols, axis=-1)


def text_mlp_ref_f32(x2d, p):
    a = jnp.maximum(x2d @ p["wa"] + p["ba"], 0.0)
    return a @ p["wb"] + p["bb"]


if __name__ == "__main__":
    key = jax.random.PRNGKey(0)
    k_vid, k_txt, k_par = jax.random.split(key, 3)

    vid_feat = jax.random.normal(k_vid, (B, T, D), jnp.float32)
    txt_feat = jax.random.normal(k_txt, (B, L, D), jnp.float32)
    txt_mask = jnp.ones((B, L), jnp.float32)

    params = init_params(k_par)
    fused = build_fused_params(params)

    out = forward(params, fused, vid_feat, txt_feat, txt_mask, mode="inference")
    jax.block_until_ready(out)

    # ---- correctness: (1) exact mirror of the fused/bf16 kernel math ----
    xv = vid_feat.reshape(-1, D).astype(jnp.bfloat16)
    xt = txt_feat.reshape(-1, D).astype(jnp.bfloat16)
    mir_stage, mir_text = fused_mirror_ref(xv, xt, fused)
    np.testing.assert_allclose(np.asarray(out["stage_logits"]),
                               np.asarray(mir_stage).reshape(B, T, 3),
                               rtol=5e-3, atol=5e-3)
    np.testing.assert_allclose(np.asarray(out["text_logits"]),
                               np.asarray(mir_text).reshape(B, L, V),
                               rtol=5e-3, atol=5e-3)

    # ---- correctness: (2) unfused f32 module math (checks the weight fold) ----
    ref_stage = stage_logits_ref_f32(vid_feat.reshape(-1, D), params["stage"]).reshape(B, T, 3)
    ref_text = text_mlp_ref_f32(txt_feat.reshape(-1, D), params["text"]).reshape(B, L, V)
    np.testing.assert_allclose(np.asarray(out["stage_logits"]), np.asarray(ref_stage),
                               rtol=5e-2, atol=3e-2)
    np.testing.assert_allclose(np.asarray(out["text_logits"]), np.asarray(ref_text),
                               rtol=5e-2, atol=3e-2)

    assert out["boxxes"].shape == (B, NUM_QUERY, 2)
    assert out["scores"].shape == (B, NUM_QUERY)

    print("KERNEL_OK")
</pallas_src>

<mosaic_0001>
module attributes {stable_mosaic.version = 11 : i64} {
  func.func @fused_heads_kernel(%arg0: memref<48x32xbf16, #tpu.memory_space<vmem>>, %arg1: memref<32x128xbf16, #tpu.memory_space<vmem>>, %arg2: memref<1x128xf32, #tpu.memory_space<vmem>>, %arg3: memref<128x128xbf16, #tpu.memory_space<vmem>>, %arg4: memref<1x128xf32, #tpu.memory_space<vmem>>, %arg5: memref<48x128xf32, #tpu.memory_space<vmem>>) attributes {dimension_semantics = [], scalar_prefetch = 0 : i64, scratch_operands = 0 : i64, tpu.core_type = #tpu.core_type<tc>} {
    %c0 = arith.constant 0 : index
    %c0_0 = arith.constant 0 : index
    %0 = vector.load %arg0[%c0, %c0_0] : memref<48x32xbf16, #tpu.memory_space<vmem>>, vector<48x32xbf16>
    %c0_1 = arith.constant 0 : index
    %c0_2 = arith.constant 0 : index
    %1 = vector.load %arg1[%c0_1, %c0_2] : memref<32x128xbf16, #tpu.memory_space<vmem>>, vector<32x128xbf16>
    %cst = arith.constant dense<0.000000e+00> : vector<48x128xf32>
    %2 = tpu.matmul %0, %1, %cst {dimension_numbers = #tpu.dot_dimension_numbers<[1], [0], [0], [1], [0, 0, 1, 1], [], []>} : vector<48x32xbf16>, vector<32x128xbf16>, vector<48x128xf32> -> vector<48x128xf32>
    %c0_3 = arith.constant 0 : index
    %c0_4 = arith.constant 0 : index
    %3 = vector.load %arg2[%c0_3, %c0_4] : memref<1x128xf32, #tpu.memory_space<vmem>>, vector<1x128xf32>
    %4 = vector.broadcast %3 : vector<1x128xf32> to vector<48x128xf32>
    %5 = arith.addf %2, %4 : vector<48x128xf32>
    %cst_5 = arith.constant 0.000000e+00 : f32
    %6 = vector.broadcast %cst_5 : f32 to vector<48x128xf32>
    %7 = arith.maximumf %5, %6 : vector<48x128xf32>
    %8 = arith.truncf %7 : vector<48x128xf32> to vector<48x128xbf16>
    %c0_6 = arith.constant 0 : index
    %c0_7 = arith.constant 0 : index
    %9 = vector.load %arg3[%c0_6, %c0_7] : memref<128x128xbf16, #tpu.memory_space<vmem>>, vector<128x128xbf16>
    %cst_8 = arith.constant dense<0.000000e+00> : vector<48x128xf32>
    %10 = tpu.matmul %8, %9, %cst_8 {dimension_numbers = #tpu.dot_dimension_numbers<[1], [0], [0], [1], [0, 0, 1, 1], [], []>} : vector<48x128xbf16>, vector<128x128xbf16>, vector<48x128xf32> -> vector<48x128xf32>
    %c0_9 = arith.constant 0 : index
    %c0_10 = arith.constant 0 : index
    %11 = vector.load %arg4[%c0_9, %c0_10] : memref<1x128xf32, #tpu.memory_space<vmem>>, vector<1x128xf32>
    %12 = vector.broadcast %11 : vector<1x128xf32> to vector<48x128xf32>
    %13 = arith.addf %10, %12 : vector<48x128xf32>
    %c0_11 = arith.constant 0 : index
    %c0_12 = arith.constant 0 : index
    %14 = vector.load %arg5[%c0_11, %c0_12] : memref<48x128xf32, #tpu.memory_space<vmem>>, vector<48x128xf32>
    tpu.vector_store %arg5[%c0_11, %c0_12], %13 {strides = array<i32>} : memref<48x128xf32, #tpu.memory_space<vmem>>, vector<48x128xf32>,
    return
  }
}

</mosaic_0001>

<bundles_post_ra>
// kernel: tpu_custom_call.1
= control target key start
LH: loop header
LB: loop body
LE: loop exit
PB: predicated region body
PF: predicated region fallthrough
CT: control target
= control target key end

     0   :  { %10 = vsyncpa [#allocation3], 0  ;;  %s564_s0 = inlined_call_operand.vmem [shape: bf16[48,32], index: 0, kind: input, shape index: {}]   ;;  %s565_s1 = inlined_call_operand.vmem [shape: bf16[32,128], index: 1, kind: input, shape index: {}]   ;;  %s566_s2 = inlined_call_operand.vmem [shape: f32[1,128], index: 2, kind: input, shape index: {}]   ;;  %s567_s3 = inlined_call_operand.hbm [shape: bf16[128,128], index: 3, kind: input, shape index: {}]   ;;  %s568_s4 = inlined_call_operand.vmem [shape: f32[1,128], index: 4, kind: input, shape index: {}]   ;;  %s569_s5 = inlined_call_operand.hbm [shape: f32[48,128], index: 5, kind: output, shape index: {}]  }
   0x1   :  { %11 = vsyncpa [#allocation4], 0  ;;  %s466_s18 = smov [#allocation2]  }
   0x2   :  { %s23_s19 = sshll.u32 %s466_s18, 4  ;;  %s24_s19 = int_to_ptr.vmem [resolvable:$true] %s23_s19 }
   0x3   :  { %s430_s20 = scalar_lea.vmem %s24_s19, 1024  ;;  %p435_p1 = scmp.lt.s32.totalorder %s24_s19, %s24_s19 }
   0x4   :  { %p431_p0 = scmp.ne.s32.totalorder %s24_s19, %s430_s20  ;;  %p436_p2 = scmp.lt.s32.totalorder %s430_s20, %s430_s20 }
   0x6   :  { %p437_p3 = por %p436_p2, %p435_p1 }
   0x8   :  { %p438_p4 = pnand %p437_p3, %p431_p0 }
   0xa   :  { %441 = shalt.err (!%p438_p4)
}
   0xb   :  { %s467_s21 = smov 64   ;;  %s468_s22 = smov 4  }
   0xc   :  { %29 = dma.hbm_to_vmem [thread:$0]  %s567_s3, 1024, %s24_s19, [#allocation3], %s467_s21, %s467_s21, %s468_s22  }
   0xd   :  { %462 = dma.done.wait [#allocation3], 1024  }
   0xe   :  { %463 = vsyncadd [#allocation3], 4294966272  ;;  %v469_v0 = vmov 0.0   ;;  %vm470_vm0 = vmmov 0   ;;  %v409_v1 = vld [vmem:[%s565_s1 + $0x8] sm:$0xff]   ;;  %v410_v2 = vld [vmem:[%s565_s1] sm:$0xff]  }
   0xf   :  { %341 = vmatprep.subr.bf16.mxu0 %v469_v0  ;;  %345 = vmatprep.mubr.msk.bf16.mxu0 %vm470_vm0, %v469_v0  ;;  %v411_v3 = vld [vmem:[%s564_s0] sm:$0xff]   ;;  %v414_v4 = vld [vmem:[#allocation2 + $0x38] sm:$0xff]   ;;  %vm80_vm1 = vcmask 261120   ;;  %v415_v5 = vld [vmem:[#allocation2 + $0x30] sm:$0xff]   ;;  %s471_s10 = smov [#allocation5]  }
  0x10   :  { %385 = vmatprep.subr.bf16.mxu1 %v469_v0  ;;  %377 = vmatprep.mubr.msk.bf16.mxu1 %vm470_vm0, %v469_v0  ;;  %v412_v6 = vld [vmem:[%s564_s0 + $0x8] sm:$0xff]   ;;  %v417_v8 = vld [vmem:[#allocation2 + $0x20] sm:$0xff]   ;;  %v413_v9 = vld [vmem:[%s564_s0 + $0x10] sm:$0xff]  }
  0x11   :  { %342 = vmatpush3.bf16.msra.mxu0 %v409_v1  ;;  %393 = vmatpush3.bf16.msra.mxu1 %v414_v4  ;;  %v416_v7 = vld [vmem:[#allocation2 + $0x28] sm:$0xff]   ;;  %v418_v10 = vld [vmem:[#allocation2 + $0x18] sm:$0xff]   ;;  %v419_v11 = vld [vmem:[#allocation2 + $0x10] sm:$0xff]  }
  0x12   :  { %343 = vmatprep.subr.bf16.mxu0 %v469_v0  ;;  %386 = vmatprep.subr.bf16.mxu1 %v469_v0  ;;  %v420_v12 = vld [vmem:[#allocation2 + $0x8] sm:$0xff]   ;;  %v421_v13 = vld [vmem:[#allocation2] sm:$0xff]  }
  0x13   :  { %v307_v14 = vld [vmem:[%s566_s2] ss:$0 sm:$0xff] }
  0x14   :  { %v316_v42 = vld [vmem:[%s568_s4] ss:$0 sm:$0xff]  ;;  %s295_s4 = sshll.u32 %s471_s10, 4  ;;  %s296_s4 = int_to_ptr.vmem [resolvable:$true] %s295_s4 }
  0x15   :  { %344 = vmatpush3.bf16.msra.mxu0 %v410_v2  ;;  %394 = vmatpush3.bf16.msra.mxu1 %v415_v5  ;;  %s442_s11 = scalar_lea.vmem %s296_s4, 768  ;;  %p447_p6 = scmp.lt.s32.totalorder %s296_s4, %s296_s4 }
  0x16   :  { %357 = vmatprep.subr.bf16.mxu0 %v469_v0  ;;  %387 = vmatprep.subr.bf16.mxu1 %v469_v0  ;;  %p443_p5 = scmp.ne.s32.totalorder %s296_s4, %s442_s11  ;;  %p448_p7 = scmp.lt.s32.totalorder %s442_s11, %s442_s11 }
  0x18   :  { %346 = vmatmul.mubr.msk.bf16.vlgmr.msra.gmra.mxu0 %vm80_vm1, %v411_v3  ;;  %p449_p8 = por %p448_p7, %p447_p6 }
  0x19   :  { %349 = vmatprep.mubr.msk.bf16.mxu0 %vm470_vm0, %v469_v0  ;;  %358 = vmatpush3.bf16.msra.mxu0 %v414_v4 }
  0x1a   :  { %359 = vmatprep.subr.bf16.mxu0 %v469_v0  ;;  %395 = vmatpush3.bf16.msra.mxu1 %v416_v7  ;;  %p450_p9 = pnand %p449_p8, %p443_p5 }
  0x1b   :  { %388 = vmatprep.subr.bf16.mxu1 %v469_v0 }
  0x1d   :  { %360 = vmatpush3.bf16.msra.mxu0 %v415_v5 }
  0x1e   :  { %361 = vmatprep.subr.bf16.mxu0 %v469_v0  ;;  %396 = vmatpush3.bf16.msra.mxu1 %v417_v8 }
  0x1f   :  { %389 = vmatprep.subr.bf16.mxu1 %v469_v0 }
  0x20   :  { %350 = vmatmul.mubr.msk.bf16.gmra.mxu0 %vm80_vm1, %v412_v6 }
  0x21   :  { %353 = vmatprep.mubr.msk.bf16.mxu0 %vm470_vm0, %v469_v0  ;;  %362 = vmatpush3.bf16.msra.mxu0 %v416_v7 }
  0x22   :  { %363 = vmatprep.subr.bf16.mxu0 %v469_v0  ;;  %397 = vmatpush3.bf16.msra.mxu1 %v418_v10 }
  0x23   :  { %390 = vmatprep.subr.bf16.mxu1 %v469_v0 }
  0x25   :  { %364 = vmatpush3.bf16.msra.mxu0 %v417_v8 }
  0x26   :  { %365 = vmatprep.subr.bf16.mxu0 %v469_v0  ;;  %398 = vmatpush3.bf16.msra.mxu1 %v419_v11 }
  0x27   :  { %391 = vmatprep.subr.bf16.mxu1 %v469_v0 }
  0x28   :  { %354 = vmatmul.mubr.msk.bf16.gmra.mxu0 %vm80_vm1, %v413_v9 }
  0x29   :  { %366 = vmatpush3.bf16.msra.mxu0 %v418_v10  ;;  %373 = vmatprep.mubr.msk.bf16.mxu0 %vm470_vm0, %v469_v0 }
  0x2a   :  { %367 = vmatprep.subr.bf16.mxu0 %v469_v0  ;;  %399 = vmatpush3.bf16.msra.mxu1 %v420_v12 }
  0x2b   :  { %392 = vmatprep.subr.bf16.mxu1 %v469_v0 }
  0x2d   :  { %368 = vmatpush3.bf16.msra.mxu0 %v419_v11 }
  0x2e   :  { %369 = vmatprep.subr.bf16.mxu0 %v469_v0  ;;  %400 = vmatpush3.bf16.msra.mxu1 %v421_v13 }
  0x31   :  { %370 = vmatpush3.bf16.msra.mxu0 %v420_v12 }
  0x32   :  { %371 = vmatprep.subr.bf16.mxu0 %v469_v0 }
  0x35   :  { %372 = vmatpush3.bf16.msra.mxu0 %v421_v13 }
  0xd8   :  { %v124_v15 = vpop.f32.mrf.mxu0 }
  0xd9   :  { %v125_v17 = vadd.f32 %v307_v14, %v124_v15 }
  0xda   :  { %v347_v16 = vpop.f32.mrf.mxu0 }
  0xdb   :  { %v147_v21 = vmax.f32 %v125_v17, 0.0 }
  0xdc   :  { %v127_v18 = vpop.f32.mrf.mxu0 }
  0xdd   :  { %v128_v19 = vadd.f32 %v307_v14, %v127_v18 }
  0xde   :  { %v348_v20 = vpop.f32.mrf.mxu0 }
  0xdf   :  { %v148_v22 = vmax.f32 %v128_v19, 0.0 }
  0xe0   :  { %v132_v23 = vpop.f32.mrf.mxu0 }
  0xe1   :  { %v153_v24 = vpack.c.bf16 %v148_v22, %v147_v21  ;;  %v133_v26 = vadd.f32 %v307_v14, %v132_v23 }
  0xe2   :  { %v351_v25 = vpop.f32.mrf.mxu0 }
  0xe3   :  { %374 = vmatmul.mubr.bf16.vlgmr.msra.gmra.mxu0 %v153_v24  ;;  %v149_v30 = vmax.f32 %v133_v26, 0.0 }
  0xe4   :  { %v135_v27 = vpop.f32.mrf.mxu0 }
  0xe5   :  { %v136_v28 = vadd.f32 %v307_v14, %v135_v27 }
  0xe6   :  { %v352_v29 = vpop.f32.mrf.mxu0 }
  0xe7   :  { %v150_v31 = vmax.f32 %v136_v28, 0.0 }
  0xe8   :  { %v140_v32 = vpop.f32.mrf.mxu0 }
  0xe9   :  { %v154_v33 = vpack.c.bf16 %v150_v31, %v149_v30  ;;  %v141_v35 = vadd.f32 %v307_v14, %v140_v32 }
  0xea   :  { %v355_v34 = vpop.f32.mrf.mxu0 }
  0xeb   :  { %378 = vmatmul.mubr.bf16.vlgmr.msra.gmra.mxu1 %v154_v33  ;;  %v151_v39 = vmax.f32 %v141_v35, 0.0 }
  0xec   :  { %v143_v36 = vpop.f32.mrf.mxu0  ;;  %381 = vmatprep.mubr.msk.bf16.mxu1 %vm470_vm0, %v469_v0 }
  0xed   :  { %v144_v37 = vadd.f32 %v307_v14, %v143_v36 }
  0xee   :  { %v356_v38 = vpop.f32.mrf.mxu0 }
  0xef   :  { %v152_v40 = vmax.f32 %v144_v37, 0.0 }
  0xf1   :  { %v155_v41 = vpack.c.bf16 %v152_v40, %v151_v39 }
  0xf3   :  { %382 = vmatmul.mubr.bf16.gmra.mxu1 %v155_v41 }
 0x1a3   :  { %v261_v43 = vpop.f32.mrf.mxu0 }
 0x1a4   :  { %v262_v44 = vadd.f32 %v316_v42, %v261_v43 }
 0x1a5   :  { %v375_v45 = vpop.f32.mrf.mxu0 }
 0x1a6   :  { %284 = vst [vmem:[#allocation5] sm:$0xff] %v262_v44 }
 0x1a7   :  { %v264_v46 = vpop.f32.mrf.mxu0 }
 0x1a8   :  { %v265_v47 = vadd.f32 %v316_v42, %v264_v46 }
 0x1a9   :  { %v376_v48 = vpop.f32.mrf.mxu0 }
 0x1aa   :  { %285 = vst [vmem:[#allocation5 + $0x8] sm:$0xff] %v265_v47 }
 0x1ab   :  { %v269_v49 = vpop.f32.mrf.mxu1 }
 0x1ac   :  { %v270_v50 = vadd.f32 %v316_v42, %v269_v49 }
 0x1ad   :  { %v379_v51 = vpop.f32.mrf.mxu1 }
 0x1ae   :  { %286 = vst [vmem:[#allocation5 + $0x10] sm:$0xff] %v270_v50 }
 0x1af   :  { %v272_v52 = vpop.f32.mrf.mxu1 }
 0x1b0   :  { %v273_v53 = vadd.f32 %v316_v42, %v272_v52 }
 0x1b1   :  { %v380_v54 = vpop.f32.mrf.mxu1 }
 0x1b2   :  { %287 = vst [vmem:[#allocation5 + $0x18] sm:$0xff] %v273_v53 }
 0x1b3   :  { %v277_v55 = vpop.f32.mrf.mxu1 }
 0x1b4   :  { %v278_v56 = vadd.f32 %v316_v42, %v277_v55 }
 0x1b5   :  { %v383_v57 = vpop.f32.mrf.mxu1 }
 0x1b6   :  { %288 = vst [vmem:[#allocation5 + $0x20] sm:$0xff] %v278_v56 }
 0x1b7   :  { %v280_v58 = vpop.f32.mrf.mxu1 }
 0x1b8   :  { %v281_v59 = vadd.f32 %v316_v42, %v280_v58 }
 0x1b9   :  { %v384_v60 = vpop.f32.mrf.mxu1 }
 0x1ba   :  { %289 = vst [vmem:[#allocation5 + $0x28] sm:$0xff] %v281_v59 }
 0x1bb   :  { %453 = shalt.err (!%p450_p9)
}
 0x1bc   :  { %s472_s12 = smov 128   ;;  %s473_s13 = smov 8  }
 0x1bd   :  { %301 = dma.vmem_to_hbm [thread:$0]  %s296_s4, 768, %s569_s5, [#allocation4], %s472_s12, %s472_s12, %s473_s13  }
 0x1be   :  { %464 = dma.done.wait [#allocation4], 768  }
 0x1bf   :  { %465 = vsyncadd [#allocation4], 4294966528 }
 0x1c0   :  { %305 = vsyncpa [#allocation3], 1 }
 0x1c1   :  { %306 = vsyncpa [#allocation4], 1 }

</bundles_post_ra>
